<compile_context>
chip_gen: v5e
topology: v5e:2x2
jax: 0.10.0
libtpu: 0.0.40
codegen_flags: <defaults>
</compile_context>

<pallas_src>
import math

import jax
import jax.numpy as jnp
from jax import lax
from jax.experimental import pallas as pl
from jax.experimental.pallas import tpu as pltpu


# --------------------------------------------------------------------------- #
# Helpers
# --------------------------------------------------------------------------- #
def _round_up(x, m):
    return ((x + m - 1) // m) * m


def _chip_generation():
    """Crude TPU generation detector: 5 = v5e or older, 6 = v6e, 7 = v7x."""
    try:
        kind = jax.devices()[0].device_kind.lower()
    except Exception:
        return 6
    for g in (7, 6):
        if f"v{g}" in kind:
            return g
    return 5 if "tpu" in kind else 6


def _pick_tile(total, preferred, mult):
    """Largest tile <= preferred that divides `total` and is a multiple of `mult`.
    Returns `total` when it already fits in one tile, None when no divisor exists
    (callers pad instead of using one huge full-extent block)."""
    if total <= preferred:
        return total
    start = preferred - (preferred % mult)
    for t in range(start, mult - 1, -mult):
        if total % t == 0:
            return t
    return None


def _pick_chunk(hw, preferred=512):
    """hw-chunk size for the one-hot gather: largest divisor of hw <= preferred,
    preferring lane (128) then sublane (16/8) multiples."""
    if hw <= preferred:
        return hw
    for mult in (128, 16, 8):
        t = _pick_tile(hw, preferred, mult)
        if t is not None:
            return t
    return hw  # awkward hw: single chunk (rare)


# --------------------------------------------------------------------------- #
# Kernel 1: value projection  (sum_i feat_i @ W_i + b, masked, emitted in bf16)
# --------------------------------------------------------------------------- #
def _make_value_proj_kernel(n_feats):
    def kernel(*refs):
        feat_refs = refs[:n_feats]
        mask_ref = refs[n_feats]                       # (1, t_len, 1) f32, 1 = padded
        w_refs = refs[n_feats + 1:2 * n_feats + 1]     # per-modality bf16 weights
        b_ref = refs[2 * n_feats + 1]                  # (1, d_model) f32
        out_ref = refs[2 * n_feats + 2]                # (1, t_len, d_model) bf16

        acc = jnp.dot(feat_refs[0][0].astype(jnp.bfloat16), w_refs[0][...],
                      preferred_element_type=jnp.float32)
        for f_ref, w_ref in zip(feat_refs[1:], w_refs[1:]):
            acc = acc + jnp.dot(f_ref[0].astype(jnp.bfloat16), w_ref[...],
                                preferred_element_type=jnp.float32)
        # TODO(synk): review suggests a lane-dense (N, Len_in) mask block; kept as a
        # (t_len, 1) column here since it multiplies a sublane-indexed row vector
        # with zero relayout and its footprint is negligible next to the features.
        acc = (acc + b_ref[...]) * (1.0 - mask_ref[0])   # zero padded positions
        out_ref[0] = acc.astype(out_ref.dtype)

    return kernel


def project_value(params, input_flatten, padding_mask, d_model):
    feats = [jnp.asarray(f) for f in input_flatten]
    N, Len_in = int(feats[0].shape[0]), int(feats[0].shape[1])
    c_sizes = [int(f.shape[-1]) for f in feats]
    n_feats = len(feats)

    # Split value_proj weight per modality: avoids the host-side channel concat.
    w_splits, off = [], 0
    for c in c_sizes:
        w_splits.append(params['w_v'][off:off + c].astype(jnp.bfloat16))
        off += c
    b_v = params['b_v'].reshape(1, d_model)

    if padding_mask is None:
        mask = jnp.zeros((N, Len_in), jnp.float32)
    else:
        mask = padding_mask.astype(jnp.float32)

    # Stage 1 is HBM-roofline bound on the feature reads: big Len_in tiles (review).
    # Feed bf16 features upstream where the pipeline allows (the kernel casts
    # whatever dtype arrives).  Pad Len_in rather than using one huge block.
    t_len = _pick_tile(Len_in, 2048, 16)
    if t_len is None:
        t_len = 2048
    len_pad = _round_up(Len_in, t_len)
    if len_pad != Len_in:
        pad = len_pad - Len_in
        feats = [jnp.pad(f, ((0, 0), (0, pad), (0, 0))) for f in feats]
        mask = jnp.pad(mask, ((0, 0), (0, pad)), constant_values=1.0)  # pad rows -> 0
    mask = mask[..., None]                               # (N, len_pad, 1)

    grid = (N, len_pad // t_len)
    in_specs = (
        [pl.BlockSpec((1, t_len, c), lambda n, t: (n, t, 0)) for c in c_sizes]
        + [pl.BlockSpec((1, t_len, 1), lambda n, t: (n, t, 0))]
        + [pl.BlockSpec(w.shape, lambda n, t: (0, 0)) for w in w_splits]
        + [pl.BlockSpec(b_v.shape, lambda n, t: (0, 0))]
    )

    value = pl.pallas_call(
        _make_value_proj_kernel(n_feats),
        out_shape=jax.ShapeDtypeStruct((N, len_pad, d_model), jnp.bfloat16),
        grid=grid,
        in_specs=in_specs,
        out_specs=pl.BlockSpec((1, t_len, d_model), lambda n, t: (n, t, 0)),
        compiler_params=pltpu.CompilerParams(
            dimension_semantics=("parallel", "parallel")),
    )(*feats, mask, *w_splits, b_v)
    return value


def _align_value_levels(value, spatial_shapes, level_start, align=16):
    """Make each level's rows start at a multiple of `align` (bf16 sublane tile) so
    the attention kernel's per-(level, chunk, head) value slices are cheap views.
    No-op when the provided level_start is already aligned (typical)."""
    hw = [h * w for h, w in spatial_shapes]
    new_starts, cur = [], 0
    for x in hw:
        new_starts.append(cur)
        cur += _round_up(x, align)
    if all(int(s) == ns for s, ns in zip(level_start, new_starts)):
        return value, [int(s) for s in level_start]
    # TODO(synk): fuse this relayout into the value-projection kernel's out_spec.
    N, _, D = value.shape
    out = jnp.zeros((N, cur, D), value.dtype)
    for s_old, s_new, x in zip(level_start, new_starts, hw):
        chunk = lax.dynamic_slice(value, (0, int(s_old), 0), (N, x, D))
        out = lax.dynamic_update_slice(out, chunk, (0, s_new, 0))
    return out, new_starts


# --------------------------------------------------------------------------- #
# Kernel 2: deformable attention (fused query proj, softmax, bilinear sampling,
#           per-level aggregation, output projection) per (batch, Lq tile).
# --------------------------------------------------------------------------- #
def _make_attn_kernel(Lq_t, d_model, H, L, P, spatial_shapes, level_start,
                      s_dtype, hw_chunk_pref=512):
    DH = d_model // H
    LP = L * P
    HLP = H * L * P

    def kernel(q_ref, v_ref, ref_ref, wqp_ref, bqp_ref, wout_ref, bout_ref, out_ref):
        q = q_ref[0]                           # (Lq_t, d_model) f32
        refp = ref_ref[0]                      # (Lq_t, 2L) f32 [x0,y0,x1,y1,...]
        zero = jnp.zeros((), s_dtype)

        # Fused sampling_offsets + attention_weights projection; kept in f32 so the
        # sampling locations match the PyTorch reference (review correctness note).
        qp = jnp.dot(q, wqp_ref[...], preferred_element_type=jnp.float32) + bqp_ref[...]
        off_x = qp[:, :HLP]                    # (h, l, p) ordered
        off_y = qp[:, HLP:2 * HLP]
        logits = qp[:, 2 * HLP:3 * HLP]

        # Per-head softmax over L*P: computed head-by-head (no (Lq_t, HLP) buffers);
        # 1/sum folded into the final per-head accumulator scale (approx recip -> EUP).
        e_heads, inv_heads = [], []
        for h in range(H):
            lg = logits[:, h * LP:(h + 1) * LP]
            e_h = jnp.exp(lg - jnp.max(lg, axis=-1, keepdims=True))
            e_heads.append(e_h)
            inv_heads.append(pl.reciprocal(jnp.sum(e_h, axis=-1, keepdims=True),
                                           approx=True))

        accs = [jnp.zeros((Lq_t, DH), jnp.float32) for _ in range(H)]

        # Level-outer / head-inner so the per-chunk iota is built once and shared by
        # all heads (review: no H*L iota re-materialization).
        for l in range(L):
            Hl, Wl = spatial_shapes[l]
            start = level_start[l]
            hw = Hl * Wl
            rx = refp[:, 2 * l:2 * l + 1]                  # (Lq_t, 1)
            ry = refp[:, 2 * l + 1:2 * l + 2]

            # Per-head bilinear corner indices / weights: small (Lq_t, P) tensors.
            per_head = []
            for h in range(H):
                base = (h * L + l) * P
                ox = off_x[:, base:base + P]               # (Lq_t, P)
                oy = off_y[:, base:base + P]
                a = e_heads[h][:, l * P:(l + 1) * P]       # unnormalized softmax
                # grid_sample(align_corners=False), offsets normalized by [W_l, H_l]:
                #   pix = (ref + off/size) * size - 0.5 = ref*size + off - 0.5
                xpix = rx * float(Wl) + ox - 0.5
                ypix = ry * float(Hl) + oy - 0.5
                x0f = jnp.floor(xpix)
                y0f = jnp.floor(ypix)
                lx = xpix - x0f
                ly = ypix - y0f
                x0 = x0f.astype(jnp.int32)
                y0 = y0f.astype(jnp.int32)
                idxs, ws = [], []
                for dy in (0, 1):
                    yi = y0 + dy
                    wy = ly if dy else (1.0 - ly)
                    vy = (yi >= 0) & (yi < Hl)
                    yc = jnp.clip(yi, 0, Hl - 1)
                    for dx in (0, 1):
                        xi = x0 + dx
                        wx = lx if dx else (1.0 - lx)
                        w = jnp.where(vy & (xi >= 0) & (xi < Wl), wx * wy * a, 0.0)
                        idxs.append(yc * Wl + jnp.clip(xi, 0, Wl - 1))   # (Lq_t, P)
                        ws.append(w.astype(s_dtype))                     # (Lq_t, P)
                per_head.append((idxs, ws))

            chunk = _pick_chunk(hw, hw_chunk_pref)
            for c0 in range(0, hw, chunk):
                cext = min(chunk, hw - c0)
                iota = lax.broadcasted_iota(jnp.int32, (Lq_t, cext), 1) + c0
                for h in range(H):
                    idxs, ws = per_head[h]
                    # Weighted one-hot S built as ONE chained expression over the
                    # 4 corners x P points within this hw chunk (no full-hw RMW),
                    # then immediately contracted on the MXU and accumulated.
                    S = None
                    for idx_c, w_c in zip(idxs, ws):
                        for p in range(P):
                            term = jnp.where(iota == idx_c[:, p:p + 1],
                                             w_c[:, p:p + 1], zero)
                            S = term if S is None else S + term
                    v_lh = v_ref[0, start + c0:start + c0 + cext,
                                 h * DH:(h + 1) * DH]                   # (cext, DH)
                    accs[h] = accs[h] + jnp.dot(S.astype(jnp.bfloat16), v_lh,
                                                preferred_element_type=jnp.float32)

        attn = jnp.concatenate([accs[h] * inv_heads[h] for h in range(H)], axis=-1)
        out = jnp.dot(attn.astype(jnp.bfloat16), wout_ref[...],
                      preferred_element_type=jnp.float32) + bout_ref[...]
        out_ref[0] = out.astype(out_ref.dtype)

    return kernel


# --------------------------------------------------------------------------- #
# Parameters (deterministic, mirrors CCDeformAttn._reset_parameters)
# --------------------------------------------------------------------------- #
def init_params(key, d_model, n_levels, n_heads, n_points, value_in_dim=336):
    H, L, P = n_heads, n_levels, n_points
    k1, k2 = jax.random.split(key)

    def xavier(k, fan_in, fan_out):
        limit = math.sqrt(6.0 / (fan_in + fan_out))
        return jax.random.uniform(k, (fan_in, fan_out), jnp.float32, -limit, limit)

    # sampling_offsets: zero weight, structured bias
    w_off = jnp.zeros((d_model, H * L * P * 2), jnp.float32)
    thetas = jnp.arange(H, dtype=jnp.float32) * (2.0 * math.pi / H)
    grid = jnp.stack([jnp.cos(thetas), jnp.sin(thetas)], axis=-1)       # (H, 2)
    grid = grid / jnp.max(jnp.abs(grid), axis=-1, keepdims=True)
    grid = jnp.tile(grid[:, None, None, :], (1, L, P, 1))               # (H, L, P, 2)
    grid = grid * jnp.arange(1, P + 1, dtype=jnp.float32)[None, None, :, None]
    b_off = grid.reshape(-1)

    # attention_weights: zero weight, zero bias
    w_attn = jnp.zeros((d_model, H * L * P), jnp.float32)
    b_attn = jnp.zeros((H * L * P,), jnp.float32)

    # value_proj / output_proj: xavier_uniform weight, zero bias
    w_v = xavier(k1, value_in_dim, d_model)
    b_v = jnp.zeros((d_model,), jnp.float32)
    w_out = xavier(k2, d_model, d_model)
    b_out = jnp.zeros((d_model,), jnp.float32)

    return dict(w_v=w_v, b_v=b_v, w_off=w_off, b_off=b_off,
                w_attn=w_attn, b_attn=b_attn, w_out=w_out, b_out=b_out)


# --------------------------------------------------------------------------- #
# Forward wrapper
# --------------------------------------------------------------------------- #
def cc_deform_attn(params, query, reference_points, input_flatten,
                   input_spatial_shapes, input_level_start_index,
                   input_padding_mask=None, *, n_heads, n_levels, n_points,
                   out_dtype=jnp.float32):
    if reference_points.shape[-1] != 2:
        # TODO(synk): reference boxes (last dim == 4) not implemented.
        raise NotImplementedError("reference_points with last dim == 4 not supported")

    N, Lq, d_model = query.shape
    H, L, P = n_heads, n_levels, n_points
    HLP = H * L * P
    spatial_shapes = [(int(h), int(w)) for h, w in input_spatial_shapes]
    level_start = [int(s) for s in input_level_start_index]
    assert sum(h * w for h, w in spatial_shapes) == int(input_flatten[0].shape[1])

    gen = _chip_generation()
    # bf16 one-hot/select math only where the VALU is bf16-capable (v6e/v7x).
    s_dtype = jnp.float32 if gen <= 5 else jnp.bfloat16

    # ---- stage 1: value projection (own kernel; emits bf16) ----
    value = project_value(params, input_flatten, input_padding_mask, d_model)
    value, level_start = _align_value_levels(value, spatial_shapes, level_start)
    Len_v = int(value.shape[1])

    # ---- stage 2: fused + reordered query-projection weights ----
    # column layout inside the kernel: [ off_x (HLP) | off_y (HLP) | logits (HLP) ]
    w_off = params['w_off'].reshape(d_model, H, L, P, 2).transpose(0, 4, 1, 2, 3)
    w_off = w_off.reshape(d_model, 2 * HLP)
    b_off = params['b_off'].reshape(H, L, P, 2).transpose(3, 0, 1, 2).reshape(2 * HLP)
    w_qp = jnp.concatenate([w_off, params['w_attn']], axis=1).astype(jnp.float32)
    b_qp = jnp.concatenate([b_off, params['b_attn']]).reshape(1, 3 * HLP)
    w_out = params['w_out'].astype(jnp.bfloat16)
    b_out = params['b_out'].reshape(1, d_model)

    refp = reference_points.reshape(N, Lq, L * 2)

    # Lq tiling: bigger tiles on v5e/v6e (128 MiB VMEM), smaller on v7x (64 MiB).
    # Pad Lq rather than using one huge full-extent block.
    lq_pref = 256 if gen >= 7 else 512
    lq_t = _pick_tile(Lq, lq_pref, 8)
    if lq_t is None:
        lq_t = lq_pref
    lq_pad = _round_up(Lq, lq_t)
    if lq_pad != Lq:
        query = jnp.pad(query, ((0, 0), (0, lq_pad - Lq), (0, 0)))
        refp = jnp.pad(refp, ((0, 0), (0, lq_pad - Lq), (0, 0)))
    if gen >= 7:
        # v7x megacore: make sure there are >= 2 grid steps to shard across 2 TCs.
        while N * (lq_pad // lq_t) < 2 and lq_t % 16 == 0:
            lq_t //= 2

    # Grid order: batch outer, Lq-tile inner -- the resident value block is DMA'd
    # once per batch, NOT once per Lq tile.  Do not flip this.
    grid = (N, lq_pad // lq_t)

    kernel = _make_attn_kernel(lq_t, d_model, H, L, P, spatial_shapes, level_start,
                               s_dtype)

    value_spec_kwargs = {}
    if gen >= 7:
        # v7x: 64 MiB physical VMEM -- single-buffer the batch-resident value block
        # (it only changes with the outer batch index).
        value_spec_kwargs["pipeline_mode"] = pl.Buffered(1)

    in_specs = [
        pl.BlockSpec((1, lq_t, d_model), lambda n, q: (n, q, 0)),        # query
        pl.BlockSpec((1, Len_v, d_model), lambda n, q: (n, 0, 0),        # value
                     **value_spec_kwargs),
        pl.BlockSpec((1, lq_t, 2 * L), lambda n, q: (n, q, 0)),          # ref points
        pl.BlockSpec(w_qp.shape, lambda n, q: (0, 0)),
        pl.BlockSpec(b_qp.shape, lambda n, q: (0, 0)),
        pl.BlockSpec(w_out.shape, lambda n, q: (0, 0)),
        pl.BlockSpec(b_out.shape, lambda n, q: (0, 0)),
    ]

    # TODO(synk): for narrow d_model (<128) the out_spec lowers to masked stores;
    # production configs (d_model=256) are already lane-dense.
    out = pl.pallas_call(
        kernel,
        out_shape=jax.ShapeDtypeStruct((N, lq_pad, d_model), out_dtype),
        grid=grid,
        in_specs=in_specs,
        out_specs=pl.BlockSpec((1, lq_t, d_model), lambda n, q: (n, q, 0)),
        compiler_params=pltpu.CompilerParams(
            dimension_semantics=("parallel", "parallel"),
            vmem_limit_bytes=(40 if gen >= 7 else 64) * 1024 * 1024),
    )(query, value, refp, w_qp, b_qp, w_out, b_out)

    return out[:, :Lq] if lq_pad != Lq else out


# --------------------------------------------------------------------------- #
# Example run
# --------------------------------------------------------------------------- #
if __name__ == "__main__":
    d_model, n_heads, n_levels, n_points = 32, 4, 2, 2
    N, Lq = 2, 8
    spatial_shapes = [(8, 8), (4, 4)]                  # per-level (H_l, W_l)
    level_start = [0, 64]
    Len_in = sum(h * w for h, w in spatial_shapes)     # 80

    key = jax.random.PRNGKey(0)
    kp, kq, kr, kf1, kf2 = jax.random.split(key, 5)

    params = init_params(kp, d_model, n_levels, n_heads, n_points, value_in_dim=336)

    query = jax.random.normal(kq, (N, Lq, d_model), jnp.float32)
    reference_points = jax.random.uniform(kr, (N, Lq, n_levels, 2), jnp.float32)
    # input_flatten is a list of per-modality features whose channels concat to 336
    feat_a = jax.random.normal(kf1, (N, Len_in, 200), jnp.float32)
    feat_b = jax.random.normal(kf2, (N, Len_in, 136), jnp.float32)
    padding_mask = jnp.zeros((N, Len_in), dtype=bool).at[1, -4:].set(True)

    out = cc_deform_attn(params, query, reference_points, (feat_a, feat_b),
                         spatial_shapes, level_start, padding_mask,
                         n_heads=n_heads, n_levels=n_levels, n_points=n_points)
    jax.block_until_ready(out)
    assert out.shape == (N, Lq, d_model)
    assert bool(jnp.all(jnp.isfinite(out)))
    print("KERNEL_OK")
</pallas_src>

<mosaic_0001>
module attributes {stable_mosaic.version = 11 : i64} {
  func.func @kernel(%arg0: i32, %arg1: i32, %arg2: memref<1x80x200xf32, #tpu.memory_space<vmem>>, %arg3: memref<1x80x136xf32, #tpu.memory_space<vmem>>, %arg4: memref<1x80x1xf32, #tpu.memory_space<vmem>>, %arg5: memref<200x32xbf16, #tpu.memory_space<vmem>>, %arg6: memref<136x32xbf16, #tpu.memory_space<vmem>>, %arg7: memref<1x32xf32, #tpu.memory_space<vmem>>, %arg8: memref<1x80x32xbf16, #tpu.memory_space<vmem>>) attributes {dimension_semantics = [#tpu.dimension_semantics<parallel>, #tpu.dimension_semantics<parallel>], iteration_bounds = array<i64: 2, 1>, scalar_prefetch = 0 : i64, scratch_operands = 0 : i64, tpu.core_type = #tpu.core_type<tc>, window_params = [{transform_indices = @transform_0, window_bounds = array<i64: 1, 80, 200>}, {transform_indices = @transform_1, window_bounds = array<i64: 1, 80, 136>}, {transform_indices = @transform_2, window_bounds = array<i64: 1, 80, 1>}, {pipeline_mode = #tpu.pipeline_mode<synchronous>, transform_indices = @transform_3, window_bounds = array<i64: 200, 32>}, {pipeline_mode = #tpu.pipeline_mode<synchronous>, transform_indices = @transform_4, window_bounds = array<i64: 136, 32>}, {pipeline_mode = #tpu.pipeline_mode<synchronous>, transform_indices = @transform_5, window_bounds = array<i64: 1, 32>}, {transform_indices = @transform_6, window_bounds = array<i64: 1, 80, 32>}]} {
    %c0 = arith.constant 0 : index
    %c0_0 = arith.constant 0 : index
    %c0_1 = arith.constant 0 : index
    %0 = vector.load %arg2[%c0, %c0_0, %c0_1] : memref<1x80x200xf32, #tpu.memory_space<vmem>>, vector<1x80x200xf32>
    %1 = vector.shape_cast %0 : vector<1x80x200xf32> to vector<80x200xf32>
    %2 = arith.truncf %1 : vector<80x200xf32> to vector<80x200xbf16>
    %c0_2 = arith.constant 0 : index
    %c0_3 = arith.constant 0 : index
    %3 = vector.load %arg5[%c0_2, %c0_3] : memref<200x32xbf16, #tpu.memory_space<vmem>>, vector<200x32xbf16>
    %cst = arith.constant dense<0.000000e+00> : vector<80x32xf32>
    %4 = tpu.matmul %2, %3, %cst {dimension_numbers = #tpu.dot_dimension_numbers<[1], [0], [0], [1], [0, 0, 1, 1], [], []>} : vector<80x200xbf16>, vector<200x32xbf16>, vector<80x32xf32> -> vector<80x32xf32>
    %c0_4 = arith.constant 0 : index
    %c0_5 = arith.constant 0 : index
    %c0_6 = arith.constant 0 : index
    %5 = vector.load %arg3[%c0_4, %c0_5, %c0_6] : memref<1x80x136xf32, #tpu.memory_space<vmem>>, vector<1x80x136xf32>
    %6 = vector.shape_cast %5 : vector<1x80x136xf32> to vector<80x136xf32>
    %7 = arith.truncf %6 : vector<80x136xf32> to vector<80x136xbf16>
    %c0_7 = arith.constant 0 : index
    %c0_8 = arith.constant 0 : index
    %8 = vector.load %arg6[%c0_7, %c0_8] : memref<136x32xbf16, #tpu.memory_space<vmem>>, vector<136x32xbf16>
    %cst_9 = arith.constant dense<0.000000e+00> : vector<80x32xf32>
    %9 = tpu.matmul %7, %8, %cst_9 {dimension_numbers = #tpu.dot_dimension_numbers<[1], [0], [0], [1], [0, 0, 1, 1], [], []>} : vector<80x136xbf16>, vector<136x32xbf16>, vector<80x32xf32> -> vector<80x32xf32>
    %10 = arith.addf %4, %9 : vector<80x32xf32>
    %c0_10 = arith.constant 0 : index
    %c0_11 = arith.constant 0 : index
    %11 = vector.load %arg7[%c0_10, %c0_11] : memref<1x32xf32, #tpu.memory_space<vmem>>, vector<1x32xf32>
    %12 = vector.broadcast %11 : vector<1x32xf32> to vector<80x32xf32>
    %13 = arith.addf %10, %12 : vector<80x32xf32>
    %c0_12 = arith.constant 0 : index
    %c0_13 = arith.constant 0 : index
    %c0_14 = arith.constant 0 : index
    %14 = vector.load %arg4[%c0_12, %c0_13, %c0_14] : memref<1x80x1xf32, #tpu.memory_space<vmem>>, vector<1x80x1xf32>
    %15 = vector.shape_cast %14 : vector<1x80x1xf32> to vector<80x1xf32>
    %cst_15 = arith.constant 1.000000e+00 : f32
    %16 = vector.broadcast %cst_15 : f32 to vector<80x1xf32>
    %17 = arith.subf %16, %15 : vector<80x1xf32>
    %18 = vector.broadcast %17 : vector<80x1xf32> to vector<80x32xf32>
    %19 = arith.mulf %13, %18 : vector<80x32xf32>
    %20 = arith.truncf %19 : vector<80x32xf32> to vector<80x32xbf16>
    %c0_16 = arith.constant 0 : index
    %c0_17 = arith.constant 0 : index
    %c0_18 = arith.constant 0 : index
    %21 = vector.load %arg8[%c0_16, %c0_17, %c0_18] : memref<1x80x32xbf16, #tpu.memory_space<vmem>>, vector<1x80x32xbf16>
    %22 = vector.shape_cast %21 : vector<1x80x32xbf16> to vector<80x32xbf16>
    %23 = vector.shape_cast %20 : vector<80x32xbf16> to vector<1x80x32xbf16>
    tpu.vector_store %arg8[%c0_16, %c0_17, %c0_18], %23 {strides = array<i32>} : memref<1x80x32xbf16, #tpu.memory_space<vmem>>, vector<1x80x32xbf16>,
    return
  }
  func.func @transform_0(%arg0: i32, %arg1: i32) -> (i32, i32, i32) {
    %c0_i32 = arith.constant 0 : i32
    %c0_i32_0 = arith.constant 0 : i32
    return %arg0, %arg1, %c0_i32 : i32, i32, i32
  }
  func.func @transform_1(%arg0: i32, %arg1: i32) -> (i32, i32, i32) {
    %c0_i32 = arith.constant 0 : i32
    %c0_i32_0 = arith.constant 0 : i32
    return %arg0, %arg1, %c0_i32 : i32, i32, i32
  }
  func.func @transform_2(%arg0: i32, %arg1: i32) -> (i32, i32, i32) {
    %c0_i32 = arith.constant 0 : i32
    %c0_i32_0 = arith.constant 0 : i32
    return %arg0, %arg1, %c0_i32 : i32, i32, i32
  }
  func.func @transform_3(%arg0: i32, %arg1: i32) -> (i32, i32) {
    %c0_i32 = arith.constant 0 : i32
    %c0_i32_0 = arith.constant 0 : i32
    %c0_i32_1 = arith.constant 0 : i32
    return %c0_i32, %c0_i32_0 : i32, i32
  }
  func.func @transform_4(%arg0: i32, %arg1: i32) -> (i32, i32) {
    %c0_i32 = arith.constant 0 : i32
    %c0_i32_0 = arith.constant 0 : i32
    %c0_i32_1 = arith.constant 0 : i32
    return %c0_i32, %c0_i32_0 : i32, i32
  }
  func.func @transform_5(%arg0: i32, %arg1: i32) -> (i32, i32) {
    %c0_i32 = arith.constant 0 : i32
    %c0_i32_0 = arith.constant 0 : i32
    %c0_i32_1 = arith.constant 0 : i32
    return %c0_i32, %c0_i32_0 : i32, i32
  }
  func.func @transform_6(%arg0: i32, %arg1: i32) -> (i32, i32, i32) {
    %c0_i32 = arith.constant 0 : i32
    %c0_i32_0 = arith.constant 0 : i32
    return %arg0, %arg1, %c0_i32 : i32, i32, i32
  }
}

</mosaic_0001>

<bundles_post_ra>
// kernel: tpu_custom_call.1
= control target key start
LH: loop header
LB: loop body
LE: loop exit
PB: predicated region body
PF: predicated region fallthrough
CT: control target
= control target key end

     0   :  { %s1230_s21 = smov 0   ;;  %s1232_s22 = smov 0   ;;  %s1449_s0 = inlined_call_operand.vmem [shape: f32[2,80,200], index: 0, kind: input, shape index: {}]   ;;  %s1450_s1 = inlined_call_operand.vmem [shape: f32[2,80,136], index: 1, kind: input, shape index: {}]   ;;  %s1451_s2 = inlined_call_operand.vmem [shape: f32[2,80,1], index: 2, kind: input, shape index: {}]   ;;  %s1452_s3 = inlined_call_operand.vmem [shape: bf16[200,32], index: 3, kind: input, shape index: {}]   ;;  %s1453_s4 = inlined_call_operand.vmem [shape: bf16[136,32], index: 4, kind: input, shape index: {}]   ;;  %s1454_s5 = inlined_call_operand.vmem [shape: f32[1,32], index: 5, kind: input, shape index: {}]   ;;  %s1455_s6 = inlined_call_operand.vmem [shape: bf16[2,80,32], index: 6, kind: output, shape index: {}]  }
   0x1   :  { %s1234_s23 = smov 0  }
   0x2 LB: > { %s28_s24 = sadd.s32 1, %s1188_s22  ;;  %p1021_p0 = scmp.ge.s32.totalorder %s1192_s23, 1  ;;  %s1192_s23 = sphi %s1234_s23, %s16_s23   ;;  %s1188_s22 = sphi %s1232_s22, %s1457_s22   ;;  %s1184_s21 = sphi %s1230_s21, %s1456_s21  }
   0x3   : > { %p30_p1 = scmp.ge.s32.totalorder %s28_s24, 2  ;;  %p269_p2 = scmp.lt.s32.totalorder %s1192_s23, 3 }
   0x5   : > { %s1459_s24 = smov (%p30_p1, %s28_s24), 0  ;;  %p270_p3 = pnand %p1021_p0, %p269_p2 }
   0x6   : > { %p328_p4 = scmp.lt.s32.totalorder (!%p270_p3), %s1184_s21, 1 }
   0x7   : > { %273 = sbr.rel (%p270_p3) target bundleno = 260 (0x104), region = 44 }
   0xc   : > { %v1137_v0 = vld [vmem:[%s1453_s4 + $0x38] sm:$0xff]  ;;  %v424_v2 = vld [vmem:[%s1452_s3 + $0x60] sm:$0xf]  ;;  %v1136_v3 = vld [vmem:[%s1453_s4 + $0x30] sm:$0xff]  ;;  %s1461_s21 = smov (!%p328_p4, %s1184_s21), 1  ;;  %vm539_vm0 = vcmask 1043456  }
   0xd   : > { %v1125_v1 = vld [vmem:[%s1452_s3 + $0x38] sm:$0xff]  ;;  %543 = vmatpush.bf16.msra.mxu0 %v1137_v0  ;;  %v1124_v4 = vld [vmem:[%s1452_s3 + $0x30] sm:$0xff]  ;;  %v660_v5 = vunpack.c.l.b16 %v424_v2  ;;  %s1138_s11 = smul.u32 160, %s1461_s21  ;;  %v1135_v8 = vld [vmem:[%s1453_s4 + $0x28] sm:$0xff]  ;;  %vm523_vm1 = vcmask 64512   ;;  %v1194_v29 = vmov 0  }
   0xe   : > { %705 = vmatpush.bf16.msra.mxu2 %v1125_v1  ;;  %v1123_v9 = vld [vmem:[%s1452_s3 + $0x28] sm:$0xff]  ;;  %v471_v10 = vld [vmem:[%s1453_s4 + $0x40] sm:$0xf]  ;;  %v1129_v11 = vld [vmem:[%s1452_s3 + $0x58] sm:$0xff]  ;;  %s1139_s7 = smul.u32 80, %s1461_s21  ;;  %1166 = vset.pattern.permute.xlu0 %v1194_v29  ;;  %vm686_vm2 = vcmask 588800  }
   0xf   : > { %v673_v6 = vpack.c.b16 %v660_v5, %v660_v5  ;;  %s1281_s20 = scalar_lea.vmem %s1450_s1, %s1138_s11  ;;  %v505_v12 = vunpack.c.l.b16 %v471_v10  ;;  %v1134_v16 = vld [vmem:[%s1453_s4 + $0x20] sm:$0xff]  ;;  %v1128_v18 = vld [vmem:[%s1452_s3 + $0x50] sm:$0xff]  ;;  %v1133_v21 = vld [vmem:[%s1453_s4 + $0x18] sm:$0xff]  ;;  %s1319_s27 = scalar_lea.vmem %s1449_s0, %s1138_s11  ;;  %1167 = vset.pattern.permute.xlu1 %v1194_v29  ;;  %1168 = vset.pattern.permute.xlu2 %v1194_v29  ;;  %vm877_vm3 = vcmask 257024  }
  0x10   : > { %v426_v13 = vld [vmem:[%s1281_s20 + $0x8] sm:$0xff]  ;;  %v428_v14 = vld [vmem:[%s1281_s20 + $0x18] sm:$0xff]  ;;  %v1122_v17 = vld [vmem:[%s1452_s3 + $0x20] sm:$0xff]  ;;  %s1308_s17 = scalar_lea.vmem %s1451_s2, %s1139_s7 }
  0x11   : > { %544 = vmatpush.bf16.msra.mxu0 %v1136_v3  ;;  %v703_v7 = vsel %vm539_vm0, %v673_v6, 0  ;;  %v514_v15 = vpack.c.b16 %v505_v12, %v505_v12  ;;  %v446_v20 = vpack.c.bf16 %v428_v14, %v426_v13  ;;  %v1121_v22 = vld [vmem:[%s1452_s3 + $0x18] sm:$0xff]  ;;  %v1127_v23 = vld [vmem:[%s1452_s3 + $0x48] sm:$0xff]  ;;  %v787_v24 = vld [vmem:[%s1308_s17] sm:$0xff] }
  0x12   : > { %706 = vmatpush.bf16.msra.mxu2 %v1124_v4  ;;  %742 = vmatpush.bf16.msra.mxu3 %v703_v7  ;;  %v1132_v25 = vld [vmem:[%s1453_s4 + $0x10] sm:$0xff]  ;;  %v797_v27 = vsub.f32 1.0, %v787_v24  ;;  %v1126_v28 = vld [vmem:[%s1452_s3 + $0x40] sm:$0xff]  ;;  %v371_v30 = vld [vmem:[%s1319_s27 + $0x8] sm:$0xff] }
  0x13   : > { %v541_v19 = vsel %vm539_vm0, %v514_v15, 0  ;;  %v1120_v26 = vld [vmem:[%s1452_s3 + $0x10] sm:$0xff]  ;;  %v373_v31 = vld [vmem:[%s1319_s27 + $0x18] sm:$0xff]  ;;  %v1131_v32 = vld [vmem:[%s1453_s4 + $0x8] sm:$0xff] }
  0x14   : > { %584 = vmatpush.bf16.msra.mxu1 %v541_v19  ;;  %809 = vperm.xlu0 %1166, %v797_v27   ;;  %v1119_v33 = vld [vmem:[%s1452_s3 + $0x8] sm:$0xff]  ;;  %v391_v34 = vpack.c.bf16 %v373_v31, %v371_v30  ;;  %v432_v36 = vld [vmem:[%s1281_s20 + $0x38] sm:$0xff]  ;;  %v1130_v37 = vld [vmem:[%s1453_s4] sm:$0xff] }
  0x15   : > { %545 = vmatpush.bf16.msra.mxu0 %v1135_v8  ;;  %v430_v35 = vld [vmem:[%s1281_s20 + $0x28] sm:$0xff]  ;;  %v1118_v38 = vld [vmem:[%s1452_s3] sm:$0xff]  ;;  %v427_v40 = vld [vmem:[%s1281_s20 + $0x10] sm:$0xff] }
  0x16   : > { %707 = vmatpush.bf16.msra.mxu2 %v1123_v9  ;;  %743 = vmatpush.bf16.msra.mxu3 %v1129_v11  ;;  %v425_v39 = vld [vmem:[%s1281_s20] sm:$0xff]  ;;  %v372_v42 = vld [vmem:[%s1319_s27 + $0x10] sm:$0xff]  ;;  %v448_v43 = vpack.c.bf16 %v432_v36, %v430_v35  ;;  %v788_v44 = vld [vmem:[%s1308_s17 + $0x8] sm:$0xff] }
  0x17   : > { %1058 = vmatmul.msk.bf16.vlgmr.msra.gmra.mxu1 %vm523_vm1, %v446_v20  ;;  %v370_v41 = vld [vmem:[%s1319_s27] sm:$0xff]  ;;  %v798_v45 = vsub.f32 1.0, %v788_v44  ;;  %v445_v46 = vpack.c.bf16 %v427_v40, %v425_v39  ;;  %v789_v48 = vld [vmem:[%s1308_s17 + $0x10] sm:$0xff]  ;;  %v375_v50 = vld [vmem:[%s1319_s27 + $0x28] sm:$0xff] }
  0x18   : > { %v390_v47 = vpack.c.bf16 %v372_v42, %v370_v41  ;;  %v799_v49 = vsub.f32 1.0, %v789_v48  ;;  %v377_v51 = vld [vmem:[%s1319_s27 + $0x38] sm:$0xff]  ;;  %v434_v53 = vld [vmem:[%s1281_s20 + $0x48] sm:$0xff]  ;;  %v429_v55 = vld [vmem:[%s1281_s20 + $0x20] sm:$0xff] }
  0x19   : > { %546 = vmatpush.bf16.msra.mxu0 %v1134_v16  ;;  %v393_v52 = vpack.c.bf16 %v377_v51, %v375_v50  ;;  %v436_v54 = vld [vmem:[%s1281_s20 + $0x58] sm:$0xff]  ;;  %v431_v56 = vld [vmem:[%s1281_s20 + $0x30] sm:$0xff]  ;;  %v374_v57 = vld [vmem:[%s1319_s27 + $0x20] sm:$0xff] }
  0x1a   : > { %708 = vmatpush.bf16.msra.mxu2 %v1122_v17  ;;  %744 = vmatpush.bf16.msra.mxu3 %v1128_v18  ;;  %v376_v58 = vld [vmem:[%s1319_s27 + $0x30] sm:$0xff]  ;;  %v450_v59 = vpack.c.bf16 %v436_v54, %v434_v53  ;;  %v790_v60 = vld [vmem:[%s1308_s17 + $0x18] sm:$0xff]  ;;  %v447_v62 = vpack.c.bf16 %v431_v56, %v429_v55  ;;  %v379_v0 = vld [vmem:[%s1319_s27 + $0x48] sm:$0xff] }
  0x1b   : > { %819 = vperm.xlu1 %1167, %v799_v49   ;;  %v800_v61 = vsub.f32 1.0, %v790_v60  ;;  %v392_v63 = vpack.c.bf16 %v376_v58, %v374_v57  ;;  %v381_v1 = vld [vmem:[%s1319_s27 + $0x58] sm:$0xff]  ;;  %v438_v3 = vld [vmem:[%s1281_s20 + $0x68] sm:$0xff]  ;;  %v433_v5 = vld [vmem:[%s1281_s20 + $0x40] sm:$0xff] }
  0x1c   : > { %814 = vperm.xlu0 %1166, %v798_v45   ;;  %v395_v2 = vpack.c.bf16 %v381_v1, %v379_v0  ;;  %v440_v4 = vld [vmem:[%s1281_s20 + $0x78] sm:$0xff]  ;;  %v435_v6 = vld [vmem:[%s1281_s20 + $0x50] sm:$0xff]  ;;  %v378_v7 = vld [vmem:[%s1319_s27 + $0x40] sm:$0xff] }
  0x1d   : > { %547 = vmatpush.bf16.msra.mxu0 %v1133_v21  ;;  %v380_v8 = vld [vmem:[%s1319_s27 + $0x50] sm:$0xff]  ;;  %v452_v9 = vpack.c.bf16 %v440_v4, %v438_v3  ;;  %v449_v12 = vpack.c.bf16 %v435_v6, %v433_v5  ;;  %v796_v14 = vld [vmem:[%s1308_s17 + $0x48] sm:$0xff]  ;;  %v791_v15 = vld [vmem:[%s1308_s17 + $0x20] sm:$0xff] }
  0x1e   : > { %709 = vmatpush.bf16.msra.mxu2 %v1121_v22  ;;  %745 = vmatpush.bf16.msra.mxu3 %v1127_v23  ;;  %v793_v10 = vld [vmem:[%s1308_s17 + $0x30] sm:$0xff]  ;;  %v394_v13 = vpack.c.bf16 %v380_v8, %v378_v7  ;;  %v794_v16 = vld [vmem:[%s1308_s17 + $0x38] sm:$0xff]  ;;  %v806_v17 = vsub.f32 1.0, %v796_v14  ;;  %v801_v18 = vsub.f32 1.0, %v791_v15  ;;  %v383_v20 = vld [vmem:[%s1319_s27 + $0x68] sm:$0xff] }
  0x1f   : > { %v803_v11 = vsub.f32 1.0, %v793_v10  ;;  %v804_v19 = vsub.f32 1.0, %v794_v16  ;;  %v385_v21 = vld [vmem:[%s1319_s27 + $0x78] sm:$0xff]  ;;  %v792_v22 = vld [vmem:[%s1308_s17 + $0x28] sm:$0xff]  ;;  %v437_v27 = vld [vmem:[%s1281_s20 + $0x60] sm:$0xff] }
  0x20   : > { %829 = vperm.xlu2 %1168, %v801_v18   ;;  %v397_v23 = vpack.c.bf16 %v385_v21, %v383_v20  ;;  %v442_v24 = vld [vmem:[%s1281_s20 + $0x88] sm:$0xff]  ;;  %v382_v29 = vld [vmem:[%s1319_s27 + $0x60] sm:$0xff]  ;;  %v384_v30 = vld [vmem:[%s1319_s27 + $0x70] sm:$0xff] }
  0x21   : > { %548 = vmatpush.bf16.msra.mxu0 %v1132_v25  ;;  %v444_v25 = vld [vmem:[%s1281_s20 + $0x98] sm:$0xff]  ;;  %v387_v36 = vld [vmem:[%s1319_s27 + $0x88] sm:$0xff]  ;;  %v441_v39 = vld [vmem:[%s1281_s20 + $0x80] sm:$0xff] }
  0x22   : > { %710 = vmatpush.bf16.msra.mxu2 %v1120_v26  ;;  %746 = vmatpush.bf16.msra.mxu3 %v1126_v28  ;;  %v802_v26 = vsub.f32 1.0, %v792_v22  ;;  %v439_v28 = vld [vmem:[%s1281_s20 + $0x70] sm:$0xff]  ;;  %v454_v31 = vpack.c.bf16 %v444_v25, %v442_v24  ;;  %v386_v41 = vld [vmem:[%s1319_s27 + $0x80] sm:$0xff] }
  0x23   : > { %824 = vperm.xlu1 %1167, %v800_v61   ;;  %v443_v40 = vld [vmem:[%s1281_s20 + $0x90] sm:$0xff]  ;;  %v1402_v53 = vld [vmem:[%s1454_s5] ss:$0 sm:$0xff]  ;;  %s1140_s20 = smul.u32 40, %s1461_s21 }
  0x24   : > { %839 = vperm.xlu0 %1166, %v803_v11   ;;  %v388_v42 = vld [vmem:[%s1319_s27 + $0x90] sm:$0xff] }
  0x25   : > { %549 = vmatpush.bf16.msra.mxu0 %v1131_v32  ;;  %1111 = vmatmul.msk.bf16.vlgmr.msra.gmra.mxu3 %vm686_vm2, %v391_v34  ;;  %v451_v32 = vpack.c.bf16 %v439_v28, %v437_v27  ;;  %v795_v34 = vld [vmem:[%s1308_s17 + $0x40] sm:$0xff]  ;;  %v398_v44 = vpack.c.bf16 %v388_v42, %v386_v41 }
  0x26   : > { %711 = vmatpush.bf16.msra.mxu2 %v1119_v33  ;;  %v396_v33 = vpack.c.bf16 %v384_v30, %v382_v29  ;;  %v805_v35 = vsub.f32 1.0, %v795_v34 }
  0x27   : > { %1059 = vmatmul.msk.bf16.gmra.mxu1 %vm523_vm1, %v448_v43  ;;  %v453_v43 = vpack.c.bf16 %v443_v40, %v441_v39 }
  0x28   : > { %834 = vperm.xlu2 %1168, %v802_v26  }
  0x29   : > { %550 = vmatpush.bf16.msra.mxu0 %v1130_v37  ;;  %v389_v37 = vld [vmem:[%s1319_s27 + $0x98] sm:$0xff]  ;;  %s1409_s27 = scalar_lea.vmem %s1455_s6, %s1140_s20 }
  0x2a   : > { %712 = vmatpush.bf16.msra.mxu2 %v1118_v38  ;;  %v399_v38 = vpack.c.bf16 %v389_v37, %v387_v36 }
  0x2b   : > { %844 = vperm.xlu1 %1167, %v804_v19  }
  0x2c   : > { %551 = vmatmul.bf16.vlgmr.msra.gmra.mxu0 %v445_v46  ;;  %854 = vperm.xlu0 %1166, %v806_v17  }
  0x2d   : > { %713 = vmatmul.bf16.vlgmr.msra.gmra.mxu2 %v390_v47 }
  0x30   : > { %849 = vperm.xlu2 %1168, %v805_v35  }
  0x35   : > { %1112 = vmatmul.msk.bf16.gmra.mxu3 %vm686_vm2, %v393_v52 }
  0x37   : > { %1060 = vmatmul.msk.bf16.gmra.mxu1 %vm523_vm1, %v450_v59 }
  0x3c   : > { %556 = vmatmul.bf16.gmra.mxu0 %v447_v62 }
  0x3d   : > { %718 = vmatmul.bf16.gmra.mxu2 %v392_v63 }
  0x45   : > { %1113 = vmatmul.msk.bf16.gmra.mxu3 %vm686_vm2, %v395_v2 }
  0x47   : > { %1061 = vmatmul.msk.bf16.gmra.mxu1 %vm523_vm1, %v452_v9 }
  0x4c   : > { %561 = vmatmul.bf16.gmra.mxu0 %v449_v12 }
  0x4d   : > { %723 = vmatmul.bf16.gmra.mxu2 %v394_v13 }
  0x55   : > { %1114 = vmatmul.msk.bf16.gmra.mxu3 %vm686_vm2, %v397_v23 }
  0x57   : > { %1062 = vmatmul.msk.bf16.gmra.mxu1 %vm523_vm1, %v454_v31 }
  0x5c   : > { %566 = vmatmul.bf16.gmra.mxu0 %v451_v32 }
  0x5d   : > { %728 = vmatmul.bf16.gmra.mxu2 %v396_v33 }
  0x65   : > { %1115 = vmatmul.msk.bf16.gmra.mxu3 %vm686_vm2, %v399_v38 }
  0x6c   : > { %571 = vmatmul.bf16.gmra.mxu0 %v453_v43 }
  0x6d   : > { %733 = vmatmul.bf16.gmra.mxu2 %v398_v44 }
  0x7a   : > { %v830_v33 = vpop.permute.xlu2 %829 }
  0x86   : > { %v810_v54 = vpop.permute.xlu0 %809 }
  0x8d   : > { %v820_v11 = vpop.permute.xlu1 %819 }
  0x8e   : > { %v815_v4 = vpop.permute.xlu0 %814 }
  0x94   : > { %v586_v45 = vpop.f32.mrf.mxu1 }
  0x95   : > { %v825_v25 = vpop.permute.xlu1 %824 }
  0x9c   : > { %v588_v46 = vpop.f32.mrf.mxu1 }
  0xa4   : > { %v591_v50 = vpop.f32.mrf.mxu1 }
  0xa8   : > { %v748_v48 = vpop.f32.mrf.mxu3 }
  0xa9   : > { %v552_v47 = vpop.f32.mrf.mxu0 }
  0xaa   : > { %v587_v49 = vadd.f32 %v586_v45, %v552_v47  ;;  %v835_v47 = vpop.permute.xlu2 %834 }
  0xac   : > { %v593_v0 = vpop.f32.mrf.mxu1 }
  0xb0   : > { %v714_v51 = vpop.f32.mrf.mxu2  ;;  %v750_v56 = vpop.f32.mrf.mxu3 }
  0xb1   : > { %v715_v52 = vadd.f32 %v714_v51, %v587_v49  ;;  %v554_v55 = vpop.f32.mrf.mxu0 }
  0xb2   : > { %v589_v59 = vadd.f32 %v588_v46, %v554_v55 }
  0xb3   : > { %v749_v57 = vadd.f32 %v748_v48, %v715_v52 }
  0xb4   : > { %v596_v15 = vpop.f32.mrf.mxu1 }
  0xb5   : > { %v777_v58 = vadd.f32 %v1402_v53, %v749_v57 }
  0xb7   : > { %v857_v60 = vmul.f32 %v810_v54, %v777_v58 }
  0xb8   : > { %v716_v61 = vpop.f32.mrf.mxu2  ;;  %v753_v2 = vpop.f32.mrf.mxu3 }
  0xb9   : > { %v867_v62 = vpack.c.bf16 %v857_v60, %v857_v60  ;;  %v717_v63 = vadd.f32 %v716_v61, %v589_v59  ;;  %v557_v1 = vpop.f32.mrf.mxu0  ;;  %v840_v59 = vpop.permute.xlu0 %839 }
  0xba   : > { %v592_v5 = vadd.f32 %v591_v50, %v557_v1 }
  0xbb   : > { %878 = vst.msk [vmem:[%s1409_s27] sm:$0xf] %vm877_vm3, %v867_v62  ;;  %v751_v3 = vadd.f32 %v750_v56, %v717_v63 }
  0xbc   : > { %v598_v28 = vpop.f32.mrf.mxu1 }
  0xbd   : > { %v778_v6 = vadd.f32 %v1402_v53, %v751_v3 }
  0xbf   : > { %v858_v7 = vmul.f32 %v815_v4, %v778_v6 }
  0xc0   : > { %v719_v8 = vpop.f32.mrf.mxu2  ;;  %v755_v13 = vpop.f32.mrf.mxu3 }
  0xc1   : > { %v868_v9 = vpack.c.bf16 %v858_v7, %v858_v7  ;;  %v720_v10 = vadd.f32 %v719_v8, %v592_v5  ;;  %v559_v12 = vpop.f32.mrf.mxu0  ;;  %v845_v5 = vpop.permute.xlu1 %844 }
  0xc2   : > { %v594_v17 = vadd.f32 %v593_v0, %v559_v12 }
  0xc3   : > { %879 = vst.msk [vmem:[%s1409_s27 + $0x4] sm:$0xf] %vm877_vm3, %v868_v9  ;;  %v754_v14 = vadd.f32 %v753_v2, %v720_v10 }
  0xc4   : > { %v601_v40 = vpop.f32.mrf.mxu1 }
  0xc5   : > { %v779_v16 = vadd.f32 %v1402_v53, %v754_v14 }
  0xc7   : > { %v859_v18 = vmul.f32 %v820_v11, %v779_v16  ;;  %v850_v16 = vpop.permute.xlu2 %849 }
  0xc8   : > { %v721_v19 = vpop.f32.mrf.mxu2  ;;  %v758_v23 = vpop.f32.mrf.mxu3 }
  0xc9   : > { %v869_v20 = vpack.c.bf16 %v859_v18, %v859_v18  ;;  %v722_v21 = vadd.f32 %v721_v19, %v594_v17  ;;  %v562_v22 = vpop.f32.mrf.mxu0 }
  0xca   : > { %v597_v26 = vadd.f32 %v596_v15, %v562_v22 }
  0xcb   : > { %880 = vst.msk [vmem:[%s1409_s27 + $0x8] sm:$0xf] %vm877_vm3, %v869_v20  ;;  %v756_v24 = vadd.f32 %v755_v13, %v722_v21 }
  0xcc   : > { %v603_v55 = vpop.f32.mrf.mxu1 }
  0xcd   : > { %v780_v27 = vadd.f32 %v1402_v53, %v756_v24 }
  0xcf   : > { %v860_v29 = vmul.f32 %v825_v25, %v780_v27 }
  0xd0   : > { %v724_v30 = vpop.f32.mrf.mxu2  ;;  %v760_v35 = vpop.f32.mrf.mxu3 }
  0xd1   : > { %v870_v31 = vpack.c.bf16 %v860_v29, %v860_v29  ;;  %v725_v32 = vadd.f32 %v724_v30, %v597_v26  ;;  %v564_v34 = vpop.f32.mrf.mxu0  ;;  %v855_v26 = vpop.permute.xlu0 %854 }
  0xd2   : > { %v599_v38 = vadd.f32 %v598_v28, %v564_v34 }
  0xd3   : > { %881 = vst.msk [vmem:[%s1409_s27 + $0xc] sm:$0xf] %vm877_vm3, %v870_v31  ;;  %v759_v36 = vadd.f32 %v758_v23, %v725_v32 }
  0xd4   : > { %v606_v4 = vpop.f32.mrf.mxu1 }
  0xd5   : > { %v781_v37 = vadd.f32 %v1402_v53, %v759_v36 }
  0xd7   : > { %v861_v39 = vmul.f32 %v830_v33, %v781_v37 }
  0xd8   : > { %v726_v41 = vpop.f32.mrf.mxu2  ;;  %v763_v46 = vpop.f32.mrf.mxu3 }
  0xd9   : > { %v871_v42 = vpack.c.bf16 %v861_v39, %v861_v39  ;;  %v727_v43 = vadd.f32 %v726_v41, %v599_v38  ;;  %v567_v44 = vpop.f32.mrf.mxu0 }
  0xda   : > { %v602_v48 = vadd.f32 %v601_v40, %v567_v44 }
  0xdb   : > { %882 = vst.msk [vmem:[%s1409_s27 + $0x10] sm:$0xf] %vm877_vm3, %v871_v42  ;;  %v761_v45 = vadd.f32 %v760_v35, %v727_v43 }
  0xdc   : > { %v608_v17 = vpop.f32.mrf.mxu1 }
  0xdd   : > { %v782_v49 = vadd.f32 %v1402_v53, %v761_v45 }
  0xdf   : > { %v862_v50 = vmul.f32 %v835_v47, %v782_v49 }
  0xe0   : > { %v729_v51 = vpop.f32.mrf.mxu2  ;;  %v765_v60 = vpop.f32.mrf.mxu3 }
  0xe1   : > { %v872_v52 = vpack.c.bf16 %v862_v50, %v862_v50  ;;  %v730_v54 = vadd.f32 %v729_v51, %v602_v48  ;;  %v569_v56 = vpop.f32.mrf.mxu0 }
  0xe2   : > { %v604_v62 = vadd.f32 %v603_v55, %v569_v56 }
  0xe3   : > { %883 = vst.msk [vmem:[%s1409_s27 + $0x14] sm:$0xf] %vm877_vm3, %v872_v52  ;;  %v764_v57 = vadd.f32 %v763_v46, %v730_v54 }
  0xe5   : > { %v783_v58 = vadd.f32 %v1402_v53, %v764_v57 }
  0xe7   : > { %v863_v61 = vmul.f32 %v840_v59, %v783_v58 }
  0xe8   : > { %v731_v63 = vpop.f32.mrf.mxu2  ;;  %v768_v9 = vpop.f32.mrf.mxu3 }
  0xe9   : > { %v873_v0 = vpack.c.bf16 %v863_v61, %v863_v61  ;;  %v732_v1 = vadd.f32 %v731_v63, %v604_v62  ;;  %v572_v2 = vpop.f32.mrf.mxu0 }
  0xea   : > { %v607_v6 = vadd.f32 %v606_v4, %v572_v2 }
  0xeb   : > { %884 = vst.msk [vmem:[%s1409_s27 + $0x18] sm:$0xf] %vm877_vm3, %v873_v0  ;;  %v766_v3 = vadd.f32 %v765_v60, %v732_v1 }
  0xed   : > { %v784_v7 = vadd.f32 %v1402_v53, %v766_v3 }
  0xef   : > { %v864_v8 = vmul.f32 %v845_v5, %v784_v7 }
  0xf0   : > { %v734_v10 = vpop.f32.mrf.mxu2  ;;  %v770_v23 = vpop.f32.mrf.mxu3 }
  0xf1   : > { %v874_v11 = vpack.c.bf16 %v864_v8, %v864_v8  ;;  %v735_v12 = vadd.f32 %v734_v10, %v607_v6  ;;  %v574_v14 = vpop.f32.mrf.mxu0 }
  0xf2   : > { %v609_v19 = vadd.f32 %v608_v17, %v574_v14 }
  0xf3   : > { %885 = vst.msk [vmem:[%s1409_s27 + $0x1c] sm:$0xf] %vm877_vm3, %v874_v11  ;;  %v769_v13 = vadd.f32 %v768_v9, %v735_v12 }
  0xf5   : > { %v785_v15 = vadd.f32 %v1402_v53, %v769_v13 }
  0xf7   : > { %v865_v18 = vmul.f32 %v850_v16, %v785_v15 }
  0xf8   : > { %v736_v20 = vpop.f32.mrf.mxu2 }
  0xf9   : > { %v875_v21 = vpack.c.bf16 %v865_v18, %v865_v18  ;;  %v737_v22 = vadd.f32 %v736_v20, %v609_v19 }
  0xfb   : > { %886 = vst.msk [vmem:[%s1409_s27 + $0x20] sm:$0xf] %vm877_vm3, %v875_v21  ;;  %v771_v24 = vadd.f32 %v770_v23, %v737_v22 }
  0xfd   : > { %v786_v25 = vadd.f32 %v1402_v53, %v771_v24 }
  0xff   : > { %v866_v27 = vmul.f32 %v855_v26, %v786_v25 }
 0x101   : > { %v876_v28 = vpack.c.bf16 %v866_v27, %v866_v27 }
 0x103   : > { %887 = vst.msk [vmem:[%s1409_s27 + $0x24] sm:$0xf] %vm877_vm3, %v876_v28 }
 0x104 PF: > { %s16_s23 = sadd.s32 1, %s1192_s23   ;;  %s1456_s21 = smov %s1188_s22 }
 0x105   : > { %p13_p5 = scmp.ge.s32.totalorder %s16_s23, 4   ;;  %s1457_s22 = smov %s1459_s24 }
 0x107   :  { %15 = sbr.rel (!%p13_p5) target bundleno = 2 (0x2), region = 80 }

</bundles_post_ra>
